<compile_context>
chip_gen: v7x
topology: tpu7x:2x2x1
jax: 0.10.0
libtpu: 0.0.40
codegen_flags: <defaults>
</compile_context>

<pallas_src>
import functools

import jax
import jax.numpy as jnp
from jax import lax
from jax.experimental import pallas as pl
from jax.experimental.pallas import tpu as pltpu

_LANE = 128
_SUB = 8
_CHUNK = _SUB * _LANE        # 1024 cells = one (8,128) f32 vreg per channel


def _round_up(x, m):
    return ((x + m - 1) // m) * m


def _cdiv(a, b):
    return -(-a // b)


def _yolo_loss_kernel(pred_ref, tgt_ref, out_ref, *, l_coord, l_noobj, n_chunks):
    """pred_ref / tgt_ref: (1, 30, sub, 128) f32 blocks (channel-major, cells
    dense on the (sublane, lane) plane).  out_ref: (1, 8, 128) partial sum."""

    def chunk(j, acc):
        row = pl.multiple_of(j * _SUB, _SUB)
        sl = pl.ds(row, _SUB)

        def P(k):
            return pred_ref[0, k, sl, :]

        def T(k):
            return tgt_ref[0, k, sl, :]

        px, py, pw, ph, pc = P(0), P(1), P(2), P(3), P(4)    # pred box 0
        qx, qy, qw, qh, qc = P(5), P(6), P(7), P(8), P(9)    # pred box 1
        tx, ty, tw, th, tc = T(0), T(1), T(2), T(3), T(4)    # target box 0
        ux, uy, uw, uh, uc = T(5), T(6), T(7), T(8), T(9)    # target box 1

        coo_b = tc > 0.0                       # cells containing an object
        coo = coo_b.astype(jnp.float32)
        noo = (tc == 0.0).astype(jnp.float32)  # cells containing no object

        # ---- no-object confidence loss (channels 4 and 9 of noo cells) ----
        noobj = noo * ((pc - tc) ** 2 + (qc - uc) ** 2)

        # ---- class loss (channels 10:30 of coo cells), fused running sum ----
        d = P(10) - T(10)
        csum = d * d
        for k in range(11, 30):
            d = P(k) - T(k)
            csum = csum + d * d
        class_term = coo * csum

        # ---- responsible-box selection: both pred boxes vs target box 0 ----
        tcx, tcy = tx / 14.0, ty / 14.0
        tx1, ty1 = tcx - 0.5 * tw, tcy - 0.5 * th
        tx2, ty2 = tcx + 0.5 * tw, tcy + 0.5 * th
        ta = (tx2 - tx1) * (ty2 - ty1)

        def iou_vs_t0(bx, by, bw, bh):
            cx, cy = bx / 14.0, by / 14.0
            x1, y1 = cx - 0.5 * bw, cy - 0.5 * bh
            x2, y2 = cx + 0.5 * bw, cy + 0.5 * bh
            area = (x2 - x1) * (y2 - y1)
            w = jnp.maximum(jnp.minimum(x2, tx2) - jnp.maximum(x1, tx1), 0.0)
            h = jnp.maximum(jnp.minimum(y2, ty2) - jnp.maximum(y1, ty1), 0.0)
            inter = w * h
            return inter / (area + ta - inter)

        iou0 = iou_vs_t0(px, py, pw, ph)
        iou1 = iou_vs_t0(qx, qy, qw, qh)
        r1 = iou1 > iou0      # True -> pred box 1 responsible (ties -> box 0)

        rx = jnp.where(r1, qx, px)
        ry = jnp.where(r1, qy, py)
        rw = jnp.where(r1, qw, pw)
        rh = jnp.where(r1, qh, ph)
        rc = jnp.where(r1, qc, pc)        # responsible pred confidence
        nc = jnp.where(r1, pc, qc)        # not-responsible pred confidence
        sx = jnp.where(r1, ux, tx)        # box_target[i + max_index]
        sy = jnp.where(r1, uy, ty)
        sw = jnp.where(r1, uw, tw)
        sh = jnp.where(r1, uh, th)

        loc = ((rx - sx) ** 2 + (ry - sy) ** 2
               + (jnp.sqrt(rw) - jnp.sqrt(sw)) ** 2
               + (jnp.sqrt(rh) - jnp.sqrt(sh)) ** 2)
        # where (not coo*loc) so sqrt-NaNs from non-object cells cannot leak.
        loc = jnp.where(coo_b, loc, 0.0)

        # contain target is 0: reference never writes column 4 of box_target_iou
        contain = coo * (rc * rc)
        not_contain = coo * (nc * nc)

        contrib = (l_coord * loc + 2.0 * contain + not_contain
                   + l_noobj * noobj + class_term)           # (8, 128)
        return acc + contrib

    acc = lax.fori_loop(0, n_chunks, chunk, jnp.zeros((_SUB, _LANE), jnp.float32))
    out_ref[0, :, :] = acc


def _default_max_tile_cells():
    # 16384 cells -> 7.5 MiB of double-buffered input VMEM: fits every
    # generation's default scoped-VMEM limit (v5e 16 MiB, v6e/v7x 32 MiB).
    # On v7x the ~0.35us/step fixed cost still dominates at 16K cells and its
    # 32 MiB scoped default comfortably holds 32K-cell tiles (15 MiB).
    try:
        kind = jax.devices()[0].device_kind.lower()
    except Exception:
        kind = ""
    return 32768 if "v7" in kind else 16384


def _pick_tiling(r, max_tile_cells):
    """(tile_cells, num_tiles) at 1024-cell granularity: minimal zero padding,
    and >=2 grid steps when possible so v7x megacore can split the tiles."""
    n_chunks = max(1, _cdiv(r, _CHUNK))
    max_chunks = max(1, max_tile_cells // _CHUNK)
    num_tiles = max(_cdiv(n_chunks, max_chunks), min(2, n_chunks))
    chunks_per_tile = _cdiv(n_chunks, num_tiles)
    num_tiles = _cdiv(n_chunks, chunks_per_tile)   # drop a fully-empty tail tile
    return chunks_per_tile * _CHUNK, num_tiles


def yolo_loss(pred, target, *, l_coord=5.0, l_noobj=0.5, max_tile_cells=None):
    """pred, target: (N, S, S, 30). Returns the scalar YOLOv1 loss (float32)."""
    n, s1, s2, c = pred.shape
    assert c == 30
    r = n * s1 * s2

    if max_tile_cells is None:
        max_tile_cells = _default_max_tile_cells()
    tile_cells, num_tiles = _pick_tiling(r, max_tile_cells)
    r_pad = tile_cells * num_tiles
    sub = tile_cells // _LANE                  # sublanes per tile (multiple of 8)

    def prep(x):
        x2 = x.reshape(r, c).astype(jnp.float32)
        # Zero-pad cells: pred==target==0 => conf==0 => zero contribution.
        x2 = jnp.pad(x2, ((0, r_pad - r), (0, 0)))
        # tile-major, channel-major within a tile, cells dense on (sublane, lane)
        return x2.reshape(num_tiles, sub, _LANE, c).transpose(0, 3, 1, 2)

    p4 = prep(pred)
    t4 = prep(target)

    kernel = functools.partial(
        _yolo_loss_kernel, l_coord=float(l_coord), l_noobj=float(l_noobj),
        n_chunks=sub // _SUB)

    partials = pl.pallas_call(
        kernel,
        out_shape=jax.ShapeDtypeStruct((num_tiles, _SUB, _LANE), jnp.float32),
        grid=(num_tiles,),
        in_specs=[
            pl.BlockSpec((1, c, sub, _LANE), lambda i: (i, 0, 0, 0)),
            pl.BlockSpec((1, c, sub, _LANE), lambda i: (i, 0, 0, 0)),
        ],
        out_specs=pl.BlockSpec((1, _SUB, _LANE), lambda i: (i, 0, 0)),
        compiler_params=pltpu.CompilerParams(
            dimension_semantics=("parallel",),
            # Let XLA fuse the pad/transpose/cast producers into the kernel's
            # inputs instead of materializing transposed copies in HBM.
            allow_input_fusion=[True, True]),
    )(p4, t4)

    # Tiny cross-tile / cross-lane reduce in the wrapper.
    return jnp.sum(partials) / jnp.float32(n)


if __name__ == "__main__":
    S, B, N = 14, 2, 2   # YOLOv1 grid; `/14.0` is hard-coded in the reference

    key = jax.random.PRNGKey(0)
    k_pred, k_tgt, k_mask = jax.random.split(key, 3)

    # Predictions in (0.05, 0.95) so sqrt(w), sqrt(h) are well defined (like
    # post-sigmoid YOLO outputs).
    pred = jax.random.uniform(k_pred, (N, S, S, 30), jnp.float32,
                              minval=0.05, maxval=0.95)

    # Targets: random box / class values, ~30% of cells contain an object.
    target = jax.random.uniform(k_tgt, (N, S, S, 30), jnp.float32,
                                minval=0.05, maxval=0.95)
    has_obj = (jax.random.uniform(k_mask, (N, S, S)) < 0.3).astype(jnp.float32)
    target = target.at[..., 4].set(has_obj)   # box-0 confidence: 1 or 0
    target = target.at[..., 9].set(has_obj)   # box-1 confidence: 1 or 0

    loss_fn = jax.jit(functools.partial(yolo_loss, l_coord=5.0, l_noobj=0.5))
    loss = jax.block_until_ready(loss_fn(pred, target))
    assert jnp.isfinite(loss), f"non-finite loss: {loss}"
    print("KERNEL_OK")
</pallas_src>

<mosaic_0001>
module attributes {stable_mosaic.version = 11 : i64} {
  func.func @_yolo_loss_kernel(%arg0: i32, %arg1: memref<1x30x8x128xf32, #tpu.memory_space<vmem>>, %arg2: memref<1x30x8x128xf32, #tpu.memory_space<vmem>>, %arg3: memref<1x8x128xf32, #tpu.memory_space<vmem>>) attributes {dimension_semantics = [#tpu.dimension_semantics<parallel>], iteration_bounds = array<i64: 1>, scalar_prefetch = 0 : i64, scratch_operands = 0 : i64, tpu.core_type = #tpu.core_type<tc>, window_params = [{transform_indices = @transform_0, window_bounds = array<i64: 1, 30, 8, 128>}, {transform_indices = @transform_1, window_bounds = array<i64: 1, 30, 8, 128>}, {transform_indices = @transform_2, window_bounds = array<i64: 1, 8, 128>}]} {
    %cst = arith.constant 0.000000e+00 : f32
    %0 = vector.broadcast %cst : f32 to vector<8x128xf32>
    %c0_i32 = arith.constant 0 : i32
    %c8_i32 = arith.constant 8 : i32
    %1 = arith.muli %c0_i32, %c8_i32 : i32
    %2 = tpu.assume_multiple %1, 8 : i32
    %c0 = arith.constant 0 : index
    %c0_0 = arith.constant 0 : index
    %3 = arith.index_cast %2 : i32 to index
    %c0_1 = arith.constant 0 : index
    %4 = vector.load %arg1[%c0, %c0_0, %3, %c0_1] : memref<1x30x8x128xf32, #tpu.memory_space<vmem>>, vector<1x1x8x128xf32>
    %5 = vector.shape_cast %4 : vector<1x1x8x128xf32> to vector<8x128xf32>
    %c0_2 = arith.constant 0 : index
    %c1 = arith.constant 1 : index
    %6 = arith.index_cast %2 : i32 to index
    %c0_3 = arith.constant 0 : index
    %7 = vector.load %arg1[%c0_2, %c1, %6, %c0_3] : memref<1x30x8x128xf32, #tpu.memory_space<vmem>>, vector<1x1x8x128xf32>
    %8 = vector.shape_cast %7 : vector<1x1x8x128xf32> to vector<8x128xf32>
    %c0_4 = arith.constant 0 : index
    %c2 = arith.constant 2 : index
    %9 = arith.index_cast %2 : i32 to index
    %c0_5 = arith.constant 0 : index
    %10 = vector.load %arg1[%c0_4, %c2, %9, %c0_5] : memref<1x30x8x128xf32, #tpu.memory_space<vmem>>, vector<1x1x8x128xf32>
    %11 = vector.shape_cast %10 : vector<1x1x8x128xf32> to vector<8x128xf32>
    %c0_6 = arith.constant 0 : index
    %c3 = arith.constant 3 : index
    %12 = arith.index_cast %2 : i32 to index
    %c0_7 = arith.constant 0 : index
    %13 = vector.load %arg1[%c0_6, %c3, %12, %c0_7] : memref<1x30x8x128xf32, #tpu.memory_space<vmem>>, vector<1x1x8x128xf32>
    %14 = vector.shape_cast %13 : vector<1x1x8x128xf32> to vector<8x128xf32>
    %c0_8 = arith.constant 0 : index
    %c4 = arith.constant 4 : index
    %15 = arith.index_cast %2 : i32 to index
    %c0_9 = arith.constant 0 : index
    %16 = vector.load %arg1[%c0_8, %c4, %15, %c0_9] : memref<1x30x8x128xf32, #tpu.memory_space<vmem>>, vector<1x1x8x128xf32>
    %17 = vector.shape_cast %16 : vector<1x1x8x128xf32> to vector<8x128xf32>
    %c0_10 = arith.constant 0 : index
    %c5 = arith.constant 5 : index
    %18 = arith.index_cast %2 : i32 to index
    %c0_11 = arith.constant 0 : index
    %19 = vector.load %arg1[%c0_10, %c5, %18, %c0_11] : memref<1x30x8x128xf32, #tpu.memory_space<vmem>>, vector<1x1x8x128xf32>
    %20 = vector.shape_cast %19 : vector<1x1x8x128xf32> to vector<8x128xf32>
    %c0_12 = arith.constant 0 : index
    %c6 = arith.constant 6 : index
    %21 = arith.index_cast %2 : i32 to index
    %c0_13 = arith.constant 0 : index
    %22 = vector.load %arg1[%c0_12, %c6, %21, %c0_13] : memref<1x30x8x128xf32, #tpu.memory_space<vmem>>, vector<1x1x8x128xf32>
    %23 = vector.shape_cast %22 : vector<1x1x8x128xf32> to vector<8x128xf32>
    %c0_14 = arith.constant 0 : index
    %c7 = arith.constant 7 : index
    %24 = arith.index_cast %2 : i32 to index
    %c0_15 = arith.constant 0 : index
    %25 = vector.load %arg1[%c0_14, %c7, %24, %c0_15] : memref<1x30x8x128xf32, #tpu.memory_space<vmem>>, vector<1x1x8x128xf32>
    %26 = vector.shape_cast %25 : vector<1x1x8x128xf32> to vector<8x128xf32>
    %c0_16 = arith.constant 0 : index
    %c8 = arith.constant 8 : index
    %27 = arith.index_cast %2 : i32 to index
    %c0_17 = arith.constant 0 : index
    %28 = vector.load %arg1[%c0_16, %c8, %27, %c0_17] : memref<1x30x8x128xf32, #tpu.memory_space<vmem>>, vector<1x1x8x128xf32>
    %29 = vector.shape_cast %28 : vector<1x1x8x128xf32> to vector<8x128xf32>
    %c0_18 = arith.constant 0 : index
    %c9 = arith.constant 9 : index
    %30 = arith.index_cast %2 : i32 to index
    %c0_19 = arith.constant 0 : index
    %31 = vector.load %arg1[%c0_18, %c9, %30, %c0_19] : memref<1x30x8x128xf32, #tpu.memory_space<vmem>>, vector<1x1x8x128xf32>
    %32 = vector.shape_cast %31 : vector<1x1x8x128xf32> to vector<8x128xf32>
    %c0_20 = arith.constant 0 : index
    %c0_21 = arith.constant 0 : index
    %33 = arith.index_cast %2 : i32 to index
    %c0_22 = arith.constant 0 : index
    %34 = vector.load %arg2[%c0_20, %c0_21, %33, %c0_22] : memref<1x30x8x128xf32, #tpu.memory_space<vmem>>, vector<1x1x8x128xf32>
    %35 = vector.shape_cast %34 : vector<1x1x8x128xf32> to vector<8x128xf32>
    %c0_23 = arith.constant 0 : index
    %c1_24 = arith.constant 1 : index
    %36 = arith.index_cast %2 : i32 to index
    %c0_25 = arith.constant 0 : index
    %37 = vector.load %arg2[%c0_23, %c1_24, %36, %c0_25] : memref<1x30x8x128xf32, #tpu.memory_space<vmem>>, vector<1x1x8x128xf32>
    %38 = vector.shape_cast %37 : vector<1x1x8x128xf32> to vector<8x128xf32>
    %c0_26 = arith.constant 0 : index
    %c2_27 = arith.constant 2 : index
    %39 = arith.index_cast %2 : i32 to index
    %c0_28 = arith.constant 0 : index
    %40 = vector.load %arg2[%c0_26, %c2_27, %39, %c0_28] : memref<1x30x8x128xf32, #tpu.memory_space<vmem>>, vector<1x1x8x128xf32>
    %41 = vector.shape_cast %40 : vector<1x1x8x128xf32> to vector<8x128xf32>
    %c0_29 = arith.constant 0 : index
    %c3_30 = arith.constant 3 : index
    %42 = arith.index_cast %2 : i32 to index
    %c0_31 = arith.constant 0 : index
    %43 = vector.load %arg2[%c0_29, %c3_30, %42, %c0_31] : memref<1x30x8x128xf32, #tpu.memory_space<vmem>>, vector<1x1x8x128xf32>
    %44 = vector.shape_cast %43 : vector<1x1x8x128xf32> to vector<8x128xf32>
    %c0_32 = arith.constant 0 : index
    %c4_33 = arith.constant 4 : index
    %45 = arith.index_cast %2 : i32 to index
    %c0_34 = arith.constant 0 : index
    %46 = vector.load %arg2[%c0_32, %c4_33, %45, %c0_34] : memref<1x30x8x128xf32, #tpu.memory_space<vmem>>, vector<1x1x8x128xf32>
    %47 = vector.shape_cast %46 : vector<1x1x8x128xf32> to vector<8x128xf32>
    %c0_35 = arith.constant 0 : index
    %c5_36 = arith.constant 5 : index
    %48 = arith.index_cast %2 : i32 to index
    %c0_37 = arith.constant 0 : index
    %49 = vector.load %arg2[%c0_35, %c5_36, %48, %c0_37] : memref<1x30x8x128xf32, #tpu.memory_space<vmem>>, vector<1x1x8x128xf32>
    %50 = vector.shape_cast %49 : vector<1x1x8x128xf32> to vector<8x128xf32>
    %c0_38 = arith.constant 0 : index
    %c6_39 = arith.constant 6 : index
    %51 = arith.index_cast %2 : i32 to index
    %c0_40 = arith.constant 0 : index
    %52 = vector.load %arg2[%c0_38, %c6_39, %51, %c0_40] : memref<1x30x8x128xf32, #tpu.memory_space<vmem>>, vector<1x1x8x128xf32>
    %53 = vector.shape_cast %52 : vector<1x1x8x128xf32> to vector<8x128xf32>
    %c0_41 = arith.constant 0 : index
    %c7_42 = arith.constant 7 : index
    %54 = arith.index_cast %2 : i32 to index
    %c0_43 = arith.constant 0 : index
    %55 = vector.load %arg2[%c0_41, %c7_42, %54, %c0_43] : memref<1x30x8x128xf32, #tpu.memory_space<vmem>>, vector<1x1x8x128xf32>
    %56 = vector.shape_cast %55 : vector<1x1x8x128xf32> to vector<8x128xf32>
    %c0_44 = arith.constant 0 : index
    %c8_45 = arith.constant 8 : index
    %57 = arith.index_cast %2 : i32 to index
    %c0_46 = arith.constant 0 : index
    %58 = vector.load %arg2[%c0_44, %c8_45, %57, %c0_46] : memref<1x30x8x128xf32, #tpu.memory_space<vmem>>, vector<1x1x8x128xf32>
    %59 = vector.shape_cast %58 : vector<1x1x8x128xf32> to vector<8x128xf32>
    %c0_47 = arith.constant 0 : index
    %c9_48 = arith.constant 9 : index
    %60 = arith.index_cast %2 : i32 to index
    %c0_49 = arith.constant 0 : index
    %61 = vector.load %arg2[%c0_47, %c9_48, %60, %c0_49] : memref<1x30x8x128xf32, #tpu.memory_space<vmem>>, vector<1x1x8x128xf32>
    %62 = vector.shape_cast %61 : vector<1x1x8x128xf32> to vector<8x128xf32>
    %cst_50 = arith.constant 0.000000e+00 : f32
    %63 = vector.broadcast %cst_50 : f32 to vector<8x128xf32>
    %64 = arith.cmpf ogt, %47, %63 : vector<8x128xf32>
    %65 = arith.extui %64 : vector<8x128xi1> to vector<8x128xi32>
    %66 = arith.sitofp %65 : vector<8x128xi32> to vector<8x128xf32>
    %cst_51 = arith.constant 0.000000e+00 : f32
    %67 = vector.broadcast %cst_51 : f32 to vector<8x128xf32>
    %68 = arith.cmpf oeq, %47, %67 : vector<8x128xf32>
    %69 = arith.extui %68 : vector<8x128xi1> to vector<8x128xi32>
    %70 = arith.sitofp %69 : vector<8x128xi32> to vector<8x128xf32>
    %71 = arith.subf %17, %47 : vector<8x128xf32>
    %72 = arith.mulf %71, %71 : vector<8x128xf32>
    %73 = arith.subf %32, %62 : vector<8x128xf32>
    %74 = arith.mulf %73, %73 : vector<8x128xf32>
    %75 = arith.addf %72, %74 : vector<8x128xf32>
    %76 = arith.mulf %70, %75 : vector<8x128xf32>
    %c0_52 = arith.constant 0 : index
    %c10 = arith.constant 10 : index
    %77 = arith.index_cast %2 : i32 to index
    %c0_53 = arith.constant 0 : index
    %78 = vector.load %arg1[%c0_52, %c10, %77, %c0_53] : memref<1x30x8x128xf32, #tpu.memory_space<vmem>>, vector<1x1x8x128xf32>
    %79 = vector.shape_cast %78 : vector<1x1x8x128xf32> to vector<8x128xf32>
    %c0_54 = arith.constant 0 : index
    %c10_55 = arith.constant 10 : index
    %80 = arith.index_cast %2 : i32 to index
    %c0_56 = arith.constant 0 : index
    %81 = vector.load %arg2[%c0_54, %c10_55, %80, %c0_56] : memref<1x30x8x128xf32, #tpu.memory_space<vmem>>, vector<1x1x8x128xf32>
    %82 = vector.shape_cast %81 : vector<1x1x8x128xf32> to vector<8x128xf32>
    %83 = arith.subf %79, %82 : vector<8x128xf32>
    %84 = arith.mulf %83, %83 : vector<8x128xf32>
    %c0_57 = arith.constant 0 : index
    %c11 = arith.constant 11 : index
    %85 = arith.index_cast %2 : i32 to index
    %c0_58 = arith.constant 0 : index
    %86 = vector.load %arg1[%c0_57, %c11, %85, %c0_58] : memref<1x30x8x128xf32, #tpu.memory_space<vmem>>, vector<1x1x8x128xf32>
    %87 = vector.shape_cast %86 : vector<1x1x8x128xf32> to vector<8x128xf32>
    %c0_59 = arith.constant 0 : index
    %c11_60 = arith.constant 11 : index
    %88 = arith.index_cast %2 : i32 to index
    %c0_61 = arith.constant 0 : index
    %89 = vector.load %arg2[%c0_59, %c11_60, %88, %c0_61] : memref<1x30x8x128xf32, #tpu.memory_space<vmem>>, vector<1x1x8x128xf32>
    %90 = vector.shape_cast %89 : vector<1x1x8x128xf32> to vector<8x128xf32>
    %91 = arith.subf %87, %90 : vector<8x128xf32>
    %92 = arith.mulf %91, %91 : vector<8x128xf32>
    %93 = arith.addf %84, %92 : vector<8x128xf32>
    %c0_62 = arith.constant 0 : index
    %c12 = arith.constant 12 : index
    %94 = arith.index_cast %2 : i32 to index
    %c0_63 = arith.constant 0 : index
    %95 = vector.load %arg1[%c0_62, %c12, %94, %c0_63] : memref<1x30x8x128xf32, #tpu.memory_space<vmem>>, vector<1x1x8x128xf32>
    %96 = vector.shape_cast %95 : vector<1x1x8x128xf32> to vector<8x128xf32>
    %c0_64 = arith.constant 0 : index
    %c12_65 = arith.constant 12 : index
    %97 = arith.index_cast %2 : i32 to index
    %c0_66 = arith.constant 0 : index
    %98 = vector.load %arg2[%c0_64, %c12_65, %97, %c0_66] : memref<1x30x8x128xf32, #tpu.memory_space<vmem>>, vector<1x1x8x128xf32>
    %99 = vector.shape_cast %98 : vector<1x1x8x128xf32> to vector<8x128xf32>
    %100 = arith.subf %96, %99 : vector<8x128xf32>
    %101 = arith.mulf %100, %100 : vector<8x128xf32>
    %102 = arith.addf %93, %101 : vector<8x128xf32>
    %c0_67 = arith.constant 0 : index
    %c13 = arith.constant 13 : index
    %103 = arith.index_cast %2 : i32 to index
    %c0_68 = arith.constant 0 : index
    %104 = vector.load %arg1[%c0_67, %c13, %103, %c0_68] : memref<1x30x8x128xf32, #tpu.memory_space<vmem>>, vector<1x1x8x128xf32>
    %105 = vector.shape_cast %104 : vector<1x1x8x128xf32> to vector<8x128xf32>
    %c0_69 = arith.constant 0 : index
    %c13_70 = arith.constant 13 : index
    %106 = arith.index_cast %2 : i32 to index
    %c0_71 = arith.constant 0 : index
    %107 = vector.load %arg2[%c0_69, %c13_70, %106, %c0_71] : memref<1x30x8x128xf32, #tpu.memory_space<vmem>>, vector<1x1x8x128xf32>
    %108 = vector.shape_cast %107 : vector<1x1x8x128xf32> to vector<8x128xf32>
    %109 = arith.subf %105, %108 : vector<8x128xf32>
    %110 = arith.mulf %109, %109 : vector<8x128xf32>
    %111 = arith.addf %102, %110 : vector<8x128xf32>
    %c0_72 = arith.constant 0 : index
    %c14 = arith.constant 14 : index
    %112 = arith.index_cast %2 : i32 to index
    %c0_73 = arith.constant 0 : index
    %113 = vector.load %arg1[%c0_72, %c14, %112, %c0_73] : memref<1x30x8x128xf32, #tpu.memory_space<vmem>>, vector<1x1x8x128xf32>
    %114 = vector.shape_cast %113 : vector<1x1x8x128xf32> to vector<8x128xf32>
    %c0_74 = arith.constant 0 : index
    %c14_75 = arith.constant 14 : index
    %115 = arith.index_cast %2 : i32 to index
    %c0_76 = arith.constant 0 : index
    %116 = vector.load %arg2[%c0_74, %c14_75, %115, %c0_76] : memref<1x30x8x128xf32, #tpu.memory_space<vmem>>, vector<1x1x8x128xf32>
    %117 = vector.shape_cast %116 : vector<1x1x8x128xf32> to vector<8x128xf32>
    %118 = arith.subf %114, %117 : vector<8x128xf32>
    %119 = arith.mulf %118, %118 : vector<8x128xf32>
    %120 = arith.addf %111, %119 : vector<8x128xf32>
    %c0_77 = arith.constant 0 : index
    %c15 = arith.constant 15 : index
    %121 = arith.index_cast %2 : i32 to index
    %c0_78 = arith.constant 0 : index
    %122 = vector.load %arg1[%c0_77, %c15, %121, %c0_78] : memref<1x30x8x128xf32, #tpu.memory_space<vmem>>, vector<1x1x8x128xf32>
    %123 = vector.shape_cast %122 : vector<1x1x8x128xf32> to vector<8x128xf32>
    %c0_79 = arith.constant 0 : index
    %c15_80 = arith.constant 15 : index
    %124 = arith.index_cast %2 : i32 to index
    %c0_81 = arith.constant 0 : index
    %125 = vector.load %arg2[%c0_79, %c15_80, %124, %c0_81] : memref<1x30x8x128xf32, #tpu.memory_space<vmem>>, vector<1x1x8x128xf32>
    %126 = vector.shape_cast %125 : vector<1x1x8x128xf32> to vector<8x128xf32>
    %127 = arith.subf %123, %126 : vector<8x128xf32>
    %128 = arith.mulf %127, %127 : vector<8x128xf32>
    %129 = arith.addf %120, %128 : vector<8x128xf32>
    %c0_82 = arith.constant 0 : index
    %c16 = arith.constant 16 : index
    %130 = arith.index_cast %2 : i32 to index
    %c0_83 = arith.constant 0 : index
    %131 = vector.load %arg1[%c0_82, %c16, %130, %c0_83] : memref<1x30x8x128xf32, #tpu.memory_space<vmem>>, vector<1x1x8x128xf32>
    %132 = vector.shape_cast %131 : vector<1x1x8x128xf32> to vector<8x128xf32>
    %c0_84 = arith.constant 0 : index
    %c16_85 = arith.constant 16 : index
    %133 = arith.index_cast %2 : i32 to index
    %c0_86 = arith.constant 0 : index
    %134 = vector.load %arg2[%c0_84, %c16_85, %133, %c0_86] : memref<1x30x8x128xf32, #tpu.memory_space<vmem>>, vector<1x1x8x128xf32>
    %135 = vector.shape_cast %134 : vector<1x1x8x128xf32> to vector<8x128xf32>
    %136 = arith.subf %132, %135 : vector<8x128xf32>
    %137 = arith.mulf %136, %136 : vector<8x128xf32>
    %138 = arith.addf %129, %137 : vector<8x128xf32>
    %c0_87 = arith.constant 0 : index
    %c17 = arith.constant 17 : index
    %139 = arith.index_cast %2 : i32 to index
    %c0_88 = arith.constant 0 : index
    %140 = vector.load %arg1[%c0_87, %c17, %139, %c0_88] : memref<1x30x8x128xf32, #tpu.memory_space<vmem>>, vector<1x1x8x128xf32>
    %141 = vector.shape_cast %140 : vector<1x1x8x128xf32> to vector<8x128xf32>
    %c0_89 = arith.constant 0 : index
    %c17_90 = arith.constant 17 : index
    %142 = arith.index_cast %2 : i32 to index
    %c0_91 = arith.constant 0 : index
    %143 = vector.load %arg2[%c0_89, %c17_90, %142, %c0_91] : memref<1x30x8x128xf32, #tpu.memory_space<vmem>>, vector<1x1x8x128xf32>
    %144 = vector.shape_cast %143 : vector<1x1x8x128xf32> to vector<8x128xf32>
    %145 = arith.subf %141, %144 : vector<8x128xf32>
    %146 = arith.mulf %145, %145 : vector<8x128xf32>
    %147 = arith.addf %138, %146 : vector<8x128xf32>
    %c0_92 = arith.constant 0 : index
    %c18 = arith.constant 18 : index
    %148 = arith.index_cast %2 : i32 to index
    %c0_93 = arith.constant 0 : index
    %149 = vector.load %arg1[%c0_92, %c18, %148, %c0_93] : memref<1x30x8x128xf32, #tpu.memory_space<vmem>>, vector<1x1x8x128xf32>
    %150 = vector.shape_cast %149 : vector<1x1x8x128xf32> to vector<8x128xf32>
    %c0_94 = arith.constant 0 : index
    %c18_95 = arith.constant 18 : index
    %151 = arith.index_cast %2 : i32 to index
    %c0_96 = arith.constant 0 : index
    %152 = vector.load %arg2[%c0_94, %c18_95, %151, %c0_96] : memref<1x30x8x128xf32, #tpu.memory_space<vmem>>, vector<1x1x8x128xf32>
    %153 = vector.shape_cast %152 : vector<1x1x8x128xf32> to vector<8x128xf32>
    %154 = arith.subf %150, %153 : vector<8x128xf32>
    %155 = arith.mulf %154, %154 : vector<8x128xf32>
    %156 = arith.addf %147, %155 : vector<8x128xf32>
    %c0_97 = arith.constant 0 : index
    %c19 = arith.constant 19 : index
    %157 = arith.index_cast %2 : i32 to index
    %c0_98 = arith.constant 0 : index
    %158 = vector.load %arg1[%c0_97, %c19, %157, %c0_98] : memref<1x30x8x128xf32, #tpu.memory_space<vmem>>, vector<1x1x8x128xf32>
    %159 = vector.shape_cast %158 : vector<1x1x8x128xf32> to vector<8x128xf32>
    %c0_99 = arith.constant 0 : index
    %c19_100 = arith.constant 19 : index
    %160 = arith.index_cast %2 : i32 to index
    %c0_101 = arith.constant 0 : index
    %161 = vector.load %arg2[%c0_99, %c19_100, %160, %c0_101] : memref<1x30x8x128xf32, #tpu.memory_space<vmem>>, vector<1x1x8x128xf32>
    %162 = vector.shape_cast %161 : vector<1x1x8x128xf32> to vector<8x128xf32>
    %163 = arith.subf %159, %162 : vector<8x128xf32>
    %164 = arith.mulf %163, %163 : vector<8x128xf32>
    %165 = arith.addf %156, %164 : vector<8x128xf32>
    %c0_102 = arith.constant 0 : index
    %c20 = arith.constant 20 : index
    %166 = arith.index_cast %2 : i32 to index
    %c0_103 = arith.constant 0 : index
    %167 = vector.load %arg1[%c0_102, %c20, %166, %c0_103] : memref<1x30x8x128xf32, #tpu.memory_space<vmem>>, vector<1x1x8x128xf32>
    %168 = vector.shape_cast %167 : vector<1x1x8x128xf32> to vector<8x128xf32>
    %c0_104 = arith.constant 0 : index
    %c20_105 = arith.constant 20 : index
    %169 = arith.index_cast %2 : i32 to index
    %c0_106 = arith.constant 0 : index
    %170 = vector.load %arg2[%c0_104, %c20_105, %169, %c0_106] : memref<1x30x8x128xf32, #tpu.memory_space<vmem>>, vector<1x1x8x128xf32>
    %171 = vector.shape_cast %170 : vector<1x1x8x128xf32> to vector<8x128xf32>
    %172 = arith.subf %168, %171 : vector<8x128xf32>
    %173 = arith.mulf %172, %172 : vector<8x128xf32>
    %174 = arith.addf %165, %173 : vector<8x128xf32>
    %c0_107 = arith.constant 0 : index
    %c21 = arith.constant 21 : index
    %175 = arith.index_cast %2 : i32 to index
    %c0_108 = arith.constant 0 : index
    %176 = vector.load %arg1[%c0_107, %c21, %175, %c0_108] : memref<1x30x8x128xf32, #tpu.memory_space<vmem>>, vector<1x1x8x128xf32>
    %177 = vector.shape_cast %176 : vector<1x1x8x128xf32> to vector<8x128xf32>
    %c0_109 = arith.constant 0 : index
    %c21_110 = arith.constant 21 : index
    %178 = arith.index_cast %2 : i32 to index
    %c0_111 = arith.constant 0 : index
    %179 = vector.load %arg2[%c0_109, %c21_110, %178, %c0_111] : memref<1x30x8x128xf32, #tpu.memory_space<vmem>>, vector<1x1x8x128xf32>
    %180 = vector.shape_cast %179 : vector<1x1x8x128xf32> to vector<8x128xf32>
    %181 = arith.subf %177, %180 : vector<8x128xf32>
    %182 = arith.mulf %181, %181 : vector<8x128xf32>
    %183 = arith.addf %174, %182 : vector<8x128xf32>
    %c0_112 = arith.constant 0 : index
    %c22 = arith.constant 22 : index
    %184 = arith.index_cast %2 : i32 to index
    %c0_113 = arith.constant 0 : index
    %185 = vector.load %arg1[%c0_112, %c22, %184, %c0_113] : memref<1x30x8x128xf32, #tpu.memory_space<vmem>>, vector<1x1x8x128xf32>
    %186 = vector.shape_cast %185 : vector<1x1x8x128xf32> to vector<8x128xf32>
    %c0_114 = arith.constant 0 : index
    %c22_115 = arith.constant 22 : index
    %187 = arith.index_cast %2 : i32 to index
    %c0_116 = arith.constant 0 : index
    %188 = vector.load %arg2[%c0_114, %c22_115, %187, %c0_116] : memref<1x30x8x128xf32, #tpu.memory_space<vmem>>, vector<1x1x8x128xf32>
    %189 = vector.shape_cast %188 : vector<1x1x8x128xf32> to vector<8x128xf32>
    %190 = arith.subf %186, %189 : vector<8x128xf32>
    %191 = arith.mulf %190, %190 : vector<8x128xf32>
    %192 = arith.addf %183, %191 : vector<8x128xf32>
    %c0_117 = arith.constant 0 : index
    %c23 = arith.constant 23 : index
    %193 = arith.index_cast %2 : i32 to index
    %c0_118 = arith.constant 0 : index
    %194 = vector.load %arg1[%c0_117, %c23, %193, %c0_118] : memref<1x30x8x128xf32, #tpu.memory_space<vmem>>, vector<1x1x8x128xf32>
    %195 = vector.shape_cast %194 : vector<1x1x8x128xf32> to vector<8x128xf32>
    %c0_119 = arith.constant 0 : index
    %c23_120 = arith.constant 23 : index
    %196 = arith.index_cast %2 : i32 to index
    %c0_121 = arith.constant 0 : index
    %197 = vector.load %arg2[%c0_119, %c23_120, %196, %c0_121] : memref<1x30x8x128xf32, #tpu.memory_space<vmem>>, vector<1x1x8x128xf32>
    %198 = vector.shape_cast %197 : vector<1x1x8x128xf32> to vector<8x128xf32>
    %199 = arith.subf %195, %198 : vector<8x128xf32>
    %200 = arith.mulf %199, %199 : vector<8x128xf32>
    %201 = arith.addf %192, %200 : vector<8x128xf32>
    %c0_122 = arith.constant 0 : index
    %c24 = arith.constant 24 : index
    %202 = arith.index_cast %2 : i32 to index
    %c0_123 = arith.constant 0 : index
    %203 = vector.load %arg1[%c0_122, %c24, %202, %c0_123] : memref<1x30x8x128xf32, #tpu.memory_space<vmem>>, vector<1x1x8x128xf32>
    %204 = vector.shape_cast %203 : vector<1x1x8x128xf32> to vector<8x128xf32>
    %c0_124 = arith.constant 0 : index
    %c24_125 = arith.constant 24 : index
    %205 = arith.index_cast %2 : i32 to index
    %c0_126 = arith.constant 0 : index
    %206 = vector.load %arg2[%c0_124, %c24_125, %205, %c0_126] : memref<1x30x8x128xf32, #tpu.memory_space<vmem>>, vector<1x1x8x128xf32>
    %207 = vector.shape_cast %206 : vector<1x1x8x128xf32> to vector<8x128xf32>
    %208 = arith.subf %204, %207 : vector<8x128xf32>
    %209 = arith.mulf %208, %208 : vector<8x128xf32>
    %210 = arith.addf %201, %209 : vector<8x128xf32>
    %c0_127 = arith.constant 0 : index
    %c25 = arith.constant 25 : index
    %211 = arith.index_cast %2 : i32 to index
    %c0_128 = arith.constant 0 : index
    %212 = vector.load %arg1[%c0_127, %c25, %211, %c0_128] : memref<1x30x8x128xf32, #tpu.memory_space<vmem>>, vector<1x1x8x128xf32>
    %213 = vector.shape_cast %212 : vector<1x1x8x128xf32> to vector<8x128xf32>
    %c0_129 = arith.constant 0 : index
    %c25_130 = arith.constant 25 : index
    %214 = arith.index_cast %2 : i32 to index
    %c0_131 = arith.constant 0 : index
    %215 = vector.load %arg2[%c0_129, %c25_130, %214, %c0_131] : memref<1x30x8x128xf32, #tpu.memory_space<vmem>>, vector<1x1x8x128xf32>
    %216 = vector.shape_cast %215 : vector<1x1x8x128xf32> to vector<8x128xf32>
    %217 = arith.subf %213, %216 : vector<8x128xf32>
    %218 = arith.mulf %217, %217 : vector<8x128xf32>
    %219 = arith.addf %210, %218 : vector<8x128xf32>
    %c0_132 = arith.constant 0 : index
    %c26 = arith.constant 26 : index
    %220 = arith.index_cast %2 : i32 to index
    %c0_133 = arith.constant 0 : index
    %221 = vector.load %arg1[%c0_132, %c26, %220, %c0_133] : memref<1x30x8x128xf32, #tpu.memory_space<vmem>>, vector<1x1x8x128xf32>
    %222 = vector.shape_cast %221 : vector<1x1x8x128xf32> to vector<8x128xf32>
    %c0_134 = arith.constant 0 : index
    %c26_135 = arith.constant 26 : index
    %223 = arith.index_cast %2 : i32 to index
    %c0_136 = arith.constant 0 : index
    %224 = vector.load %arg2[%c0_134, %c26_135, %223, %c0_136] : memref<1x30x8x128xf32, #tpu.memory_space<vmem>>, vector<1x1x8x128xf32>
    %225 = vector.shape_cast %224 : vector<1x1x8x128xf32> to vector<8x128xf32>
    %226 = arith.subf %222, %225 : vector<8x128xf32>
    %227 = arith.mulf %226, %226 : vector<8x128xf32>
    %228 = arith.addf %219, %227 : vector<8x128xf32>
    %c0_137 = arith.constant 0 : index
    %c27 = arith.constant 27 : index
    %229 = arith.index_cast %2 : i32 to index
    %c0_138 = arith.constant 0 : index
    %230 = vector.load %arg1[%c0_137, %c27, %229, %c0_138] : memref<1x30x8x128xf32, #tpu.memory_space<vmem>>, vector<1x1x8x128xf32>
    %231 = vector.shape_cast %230 : vector<1x1x8x128xf32> to vector<8x128xf32>
    %c0_139 = arith.constant 0 : index
    %c27_140 = arith.constant 27 : index
    %232 = arith.index_cast %2 : i32 to index
    %c0_141 = arith.constant 0 : index
    %233 = vector.load %arg2[%c0_139, %c27_140, %232, %c0_141] : memref<1x30x8x128xf32, #tpu.memory_space<vmem>>, vector<1x1x8x128xf32>
    %234 = vector.shape_cast %233 : vector<1x1x8x128xf32> to vector<8x128xf32>
    %235 = arith.subf %231, %234 : vector<8x128xf32>
    %236 = arith.mulf %235, %235 : vector<8x128xf32>
    %237 = arith.addf %228, %236 : vector<8x128xf32>
    %c0_142 = arith.constant 0 : index
    %c28 = arith.constant 28 : index
    %238 = arith.index_cast %2 : i32 to index
    %c0_143 = arith.constant 0 : index
    %239 = vector.load %arg1[%c0_142, %c28, %238, %c0_143] : memref<1x30x8x128xf32, #tpu.memory_space<vmem>>, vector<1x1x8x128xf32>
    %240 = vector.shape_cast %239 : vector<1x1x8x128xf32> to vector<8x128xf32>
    %c0_144 = arith.constant 0 : index
    %c28_145 = arith.constant 28 : index
    %241 = arith.index_cast %2 : i32 to index
    %c0_146 = arith.constant 0 : index
    %242 = vector.load %arg2[%c0_144, %c28_145, %241, %c0_146] : memref<1x30x8x128xf32, #tpu.memory_space<vmem>>, vector<1x1x8x128xf32>
    %243 = vector.shape_cast %242 : vector<1x1x8x128xf32> to vector<8x128xf32>
    %244 = arith.subf %240, %243 : vector<8x128xf32>
    %245 = arith.mulf %244, %244 : vector<8x128xf32>
    %246 = arith.addf %237, %245 : vector<8x128xf32>
    %c0_147 = arith.constant 0 : index
    %c29 = arith.constant 29 : index
    %247 = arith.index_cast %2 : i32 to index
    %c0_148 = arith.constant 0 : index
    %248 = vector.load %arg1[%c0_147, %c29, %247, %c0_148] : memref<1x30x8x128xf32, #tpu.memory_space<vmem>>, vector<1x1x8x128xf32>
    %249 = vector.shape_cast %248 : vector<1x1x8x128xf32> to vector<8x128xf32>
    %c0_149 = arith.constant 0 : index
    %c29_150 = arith.constant 29 : index
    %250 = arith.index_cast %2 : i32 to index
    %c0_151 = arith.constant 0 : index
    %251 = vector.load %arg2[%c0_149, %c29_150, %250, %c0_151] : memref<1x30x8x128xf32, #tpu.memory_space<vmem>>, vector<1x1x8x128xf32>
    %252 = vector.shape_cast %251 : vector<1x1x8x128xf32> to vector<8x128xf32>
    %253 = arith.subf %249, %252 : vector<8x128xf32>
    %254 = arith.mulf %253, %253 : vector<8x128xf32>
    %255 = arith.addf %246, %254 : vector<8x128xf32>
    %256 = arith.mulf %66, %255 : vector<8x128xf32>
    %cst_152 = arith.constant 1.400000e+01 : f32
    %257 = vector.broadcast %cst_152 : f32 to vector<8x128xf32>
    %258 = arith.divf %35, %257 : vector<8x128xf32>
    %cst_153 = arith.constant 1.400000e+01 : f32
    %259 = vector.broadcast %cst_153 : f32 to vector<8x128xf32>
    %260 = arith.divf %38, %259 : vector<8x128xf32>
    %cst_154 = arith.constant 5.000000e-01 : f32
    %261 = vector.broadcast %cst_154 : f32 to vector<8x128xf32>
    %262 = arith.mulf %261, %41 : vector<8x128xf32>
    %263 = arith.subf %258, %262 : vector<8x128xf32>
    %cst_155 = arith.constant 5.000000e-01 : f32
    %264 = vector.broadcast %cst_155 : f32 to vector<8x128xf32>
    %265 = arith.mulf %264, %44 : vector<8x128xf32>
    %266 = arith.subf %260, %265 : vector<8x128xf32>
    %cst_156 = arith.constant 5.000000e-01 : f32
    %267 = vector.broadcast %cst_156 : f32 to vector<8x128xf32>
    %268 = arith.mulf %267, %41 : vector<8x128xf32>
    %269 = arith.addf %258, %268 : vector<8x128xf32>
    %cst_157 = arith.constant 5.000000e-01 : f32
    %270 = vector.broadcast %cst_157 : f32 to vector<8x128xf32>
    %271 = arith.mulf %270, %44 : vector<8x128xf32>
    %272 = arith.addf %260, %271 : vector<8x128xf32>
    %273 = arith.subf %269, %263 : vector<8x128xf32>
    %274 = arith.subf %272, %266 : vector<8x128xf32>
    %275 = arith.mulf %273, %274 : vector<8x128xf32>
    %cst_158 = arith.constant 1.400000e+01 : f32
    %276 = vector.broadcast %cst_158 : f32 to vector<8x128xf32>
    %277 = arith.divf %5, %276 : vector<8x128xf32>
    %cst_159 = arith.constant 1.400000e+01 : f32
    %278 = vector.broadcast %cst_159 : f32 to vector<8x128xf32>
    %279 = arith.divf %8, %278 : vector<8x128xf32>
    %cst_160 = arith.constant 5.000000e-01 : f32
    %280 = vector.broadcast %cst_160 : f32 to vector<8x128xf32>
    %281 = arith.mulf %280, %11 : vector<8x128xf32>
    %282 = arith.subf %277, %281 : vector<8x128xf32>
    %cst_161 = arith.constant 5.000000e-01 : f32
    %283 = vector.broadcast %cst_161 : f32 to vector<8x128xf32>
    %284 = arith.mulf %283, %14 : vector<8x128xf32>
    %285 = arith.subf %279, %284 : vector<8x128xf32>
    %cst_162 = arith.constant 5.000000e-01 : f32
    %286 = vector.broadcast %cst_162 : f32 to vector<8x128xf32>
    %287 = arith.mulf %286, %11 : vector<8x128xf32>
    %288 = arith.addf %277, %287 : vector<8x128xf32>
    %cst_163 = arith.constant 5.000000e-01 : f32
    %289 = vector.broadcast %cst_163 : f32 to vector<8x128xf32>
    %290 = arith.mulf %289, %14 : vector<8x128xf32>
    %291 = arith.addf %279, %290 : vector<8x128xf32>
    %292 = arith.subf %288, %282 : vector<8x128xf32>
    %293 = arith.subf %291, %285 : vector<8x128xf32>
    %294 = arith.mulf %292, %293 : vector<8x128xf32>
    %295 = arith.minimumf %288, %269 : vector<8x128xf32>
    %296 = arith.maximumf %282, %263 : vector<8x128xf32>
    %297 = arith.subf %295, %296 : vector<8x128xf32>
    %cst_164 = arith.constant 0.000000e+00 : f32
    %298 = vector.broadcast %cst_164 : f32 to vector<8x128xf32>
    %299 = arith.maximumf %297, %298 : vector<8x128xf32>
    %300 = arith.minimumf %291, %272 : vector<8x128xf32>
    %301 = arith.maximumf %285, %266 : vector<8x128xf32>
    %302 = arith.subf %300, %301 : vector<8x128xf32>
    %cst_165 = arith.constant 0.000000e+00 : f32
    %303 = vector.broadcast %cst_165 : f32 to vector<8x128xf32>
    %304 = arith.maximumf %302, %303 : vector<8x128xf32>
    %305 = arith.mulf %299, %304 : vector<8x128xf32>
    %306 = arith.addf %294, %275 : vector<8x128xf32>
    %307 = arith.subf %306, %305 : vector<8x128xf32>
    %308 = arith.divf %305, %307 : vector<8x128xf32>
    %cst_166 = arith.constant 1.400000e+01 : f32
    %309 = vector.broadcast %cst_166 : f32 to vector<8x128xf32>
    %310 = arith.divf %20, %309 : vector<8x128xf32>
    %cst_167 = arith.constant 1.400000e+01 : f32
    %311 = vector.broadcast %cst_167 : f32 to vector<8x128xf32>
    %312 = arith.divf %23, %311 : vector<8x128xf32>
    %cst_168 = arith.constant 5.000000e-01 : f32
    %313 = vector.broadcast %cst_168 : f32 to vector<8x128xf32>
    %314 = arith.mulf %313, %26 : vector<8x128xf32>
    %315 = arith.subf %310, %314 : vector<8x128xf32>
    %cst_169 = arith.constant 5.000000e-01 : f32
    %316 = vector.broadcast %cst_169 : f32 to vector<8x128xf32>
    %317 = arith.mulf %316, %29 : vector<8x128xf32>
    %318 = arith.subf %312, %317 : vector<8x128xf32>
    %cst_170 = arith.constant 5.000000e-01 : f32
    %319 = vector.broadcast %cst_170 : f32 to vector<8x128xf32>
    %320 = arith.mulf %319, %26 : vector<8x128xf32>
    %321 = arith.addf %310, %320 : vector<8x128xf32>
    %cst_171 = arith.constant 5.000000e-01 : f32
    %322 = vector.broadcast %cst_171 : f32 to vector<8x128xf32>
    %323 = arith.mulf %322, %29 : vector<8x128xf32>
    %324 = arith.addf %312, %323 : vector<8x128xf32>
    %325 = arith.subf %321, %315 : vector<8x128xf32>
    %326 = arith.subf %324, %318 : vector<8x128xf32>
    %327 = arith.mulf %325, %326 : vector<8x128xf32>
    %328 = arith.minimumf %321, %269 : vector<8x128xf32>
    %329 = arith.maximumf %315, %263 : vector<8x128xf32>
    %330 = arith.subf %328, %329 : vector<8x128xf32>
    %cst_172 = arith.constant 0.000000e+00 : f32
    %331 = vector.broadcast %cst_172 : f32 to vector<8x128xf32>
    %332 = arith.maximumf %330, %331 : vector<8x128xf32>
    %333 = arith.minimumf %324, %272 : vector<8x128xf32>
    %334 = arith.maximumf %318, %266 : vector<8x128xf32>
    %335 = arith.subf %333, %334 : vector<8x128xf32>
    %cst_173 = arith.constant 0.000000e+00 : f32
    %336 = vector.broadcast %cst_173 : f32 to vector<8x128xf32>
    %337 = arith.maximumf %335, %336 : vector<8x128xf32>
    %338 = arith.mulf %332, %337 : vector<8x128xf32>
    %339 = arith.addf %327, %275 : vector<8x128xf32>
    %340 = arith.subf %339, %338 : vector<8x128xf32>
    %341 = arith.divf %338, %340 : vector<8x128xf32>
    %342 = arith.cmpf ogt, %341, %308 : vector<8x128xf32>
    %343 = arith.select %342, %20, %5 : vector<8x128xi1>, vector<8x128xf32>
    %344 = arith.select %342, %23, %8 : vector<8x128xi1>, vector<8x128xf32>
    %345 = arith.select %342, %26, %11 : vector<8x128xi1>, vector<8x128xf32>
    %346 = arith.select %342, %29, %14 : vector<8x128xi1>, vector<8x128xf32>
    %347 = arith.select %342, %32, %17 : vector<8x128xi1>, vector<8x128xf32>
    %348 = arith.select %342, %17, %32 : vector<8x128xi1>, vector<8x128xf32>
    %349 = arith.select %342, %50, %35 : vector<8x128xi1>, vector<8x128xf32>
    %350 = arith.select %342, %53, %38 : vector<8x128xi1>, vector<8x128xf32>
    %351 = arith.select %342, %56, %41 : vector<8x128xi1>, vector<8x128xf32>
    %352 = arith.select %342, %59, %44 : vector<8x128xi1>, vector<8x128xf32>
    %353 = arith.subf %343, %349 : vector<8x128xf32>
    %354 = arith.mulf %353, %353 : vector<8x128xf32>
    %355 = arith.subf %344, %350 : vector<8x128xf32>
    %356 = arith.mulf %355, %355 : vector<8x128xf32>
    %357 = arith.addf %354, %356 : vector<8x128xf32>
    %358 = math.sqrt %345 : vector<8x128xf32>
    %359 = math.sqrt %351 : vector<8x128xf32>
    %360 = arith.subf %358, %359 : vector<8x128xf32>
    %361 = arith.mulf %360, %360 : vector<8x128xf32>
    %362 = arith.addf %357, %361 : vector<8x128xf32>
    %363 = math.sqrt %346 : vector<8x128xf32>
    %364 = math.sqrt %352 : vector<8x128xf32>
    %365 = arith.subf %363, %364 : vector<8x128xf32>
    %366 = arith.mulf %365, %365 : vector<8x128xf32>
    %367 = arith.addf %362, %366 : vector<8x128xf32>
    %cst_174 = arith.constant 0.000000e+00 : f32
    %368 = vector.broadcast %cst_174 : f32 to vector<8x128xf32>
    %369 = arith.select %64, %367, %368 : vector<8x128xi1>, vector<8x128xf32>
    %370 = arith.mulf %347, %347 : vector<8x128xf32>
    %371 = arith.mulf %66, %370 : vector<8x128xf32>
    %372 = arith.mulf %348, %348 : vector<8x128xf32>
    %373 = arith.mulf %66, %372 : vector<8x128xf32>
    %cst_175 = arith.constant 5.000000e+00 : f32
    %374 = vector.broadcast %cst_175 : f32 to vector<8x128xf32>
    %375 = arith.mulf %374, %369 : vector<8x128xf32>
    %cst_176 = arith.constant 2.000000e+00 : f32
    %376 = vector.broadcast %cst_176 : f32 to vector<8x128xf32>
    %377 = arith.mulf %376, %371 : vector<8x128xf32>
    %378 = arith.addf %375, %377 : vector<8x128xf32>
    %379 = arith.addf %378, %373 : vector<8x128xf32>
    %cst_177 = arith.constant 5.000000e-01 : f32
    %380 = vector.broadcast %cst_177 : f32 to vector<8x128xf32>
    %381 = arith.mulf %380, %76 : vector<8x128xf32>
    %382 = arith.addf %379, %381 : vector<8x128xf32>
    %383 = arith.addf %382, %256 : vector<8x128xf32>
    %384 = arith.addf %0, %383 : vector<8x128xf32>
    %c1_i32 = arith.constant 1 : i32
    %c0_178 = arith.constant 0 : index
    %c0_179 = arith.constant 0 : index
    %c0_180 = arith.constant 0 : index
    %385 = vector.load %arg3[%c0_178, %c0_179, %c0_180] : memref<1x8x128xf32, #tpu.memory_space<vmem>>, vector<1x8x128xf32>
    %386 = vector.shape_cast %385 : vector<1x8x128xf32> to vector<8x128xf32>
    %387 = vector.shape_cast %384 : vector<8x128xf32> to vector<1x8x128xf32>
    tpu.vector_store %arg3[%c0_178, %c0_179, %c0_180], %387 {strides = array<i32>} : memref<1x8x128xf32, #tpu.memory_space<vmem>>, vector<1x8x128xf32>,
    return
  }
  func.func @transform_0(%arg0: i32) -> (i32, i32, i32, i32) {
    %c0_i32 = arith.constant 0 : i32
    %c0_i32_0 = arith.constant 0 : i32
    %c0_i32_1 = arith.constant 0 : i32
    %c0_i32_2 = arith.constant 0 : i32
    return %arg0, %c0_i32, %c0_i32_0, %c0_i32_1 : i32, i32, i32, i32
  }
  func.func @transform_1(%arg0: i32) -> (i32, i32, i32, i32) {
    %c0_i32 = arith.constant 0 : i32
    %c0_i32_0 = arith.constant 0 : i32
    %c0_i32_1 = arith.constant 0 : i32
    %c0_i32_2 = arith.constant 0 : i32
    return %arg0, %c0_i32, %c0_i32_0, %c0_i32_1 : i32, i32, i32, i32
  }
  func.func @transform_2(%arg0: i32) -> (i32, i32, i32) {
    %c0_i32 = arith.constant 0 : i32
    %c0_i32_0 = arith.constant 0 : i32
    %c0_i32_1 = arith.constant 0 : i32
    return %arg0, %c0_i32, %c0_i32_0 : i32, i32, i32
  }
}

</mosaic_0001>

<bundles_post_ra>
// kernel: yolo_loss.2
= control target key start
LH: loop header
LB: loop body
LE: loop exit
PB: predicated region body
PF: predicated region fallthrough
CT: control target
= control target key end

     0   :  { %s1116_s0 = inlined_call_operand.vmem [shape: f32[1,8,128,30], index: 0, kind: input, shape index: {}]   ;;  %s1117_s1 = inlined_call_operand.vmem [shape: f32[1,8,128,30], index: 1, kind: input, shape index: {}]   ;;  %s1118_s2 = inlined_call_operand.vmem [shape: f32[1,8,128], index: 2, kind: output, shape index: {}]  }
   0x1   :  { %v804_v0 = vld [vmem:[%s1117_s1] sm:$0xff]  ;;  %v809_v1 = vld [vmem:[%s1117_s1 + $0x10] sm:$0xff]  ;;  %v814_v2 = vld [vmem:[%s1117_s1 + $0x8] sm:$0xff] }
   0x2   :  { %v819_v3 = vld [vmem:[%s1117_s1 + $0x18] sm:$0xff]  ;;  %v824_v4 = vld [vmem:[%s1117_s1 + $0x28] sm:$0xff]  ;;  %v538_v6 = vmul.f32 0.071428575, %v804_v0  ;;  %v540_v7 = vmul.f32 0.5, %v809_v1  ;;  %v836_v8 = vld [vmem:[%s1117_s1 + $0x30] sm:$0xff] }
   0x3   :  { %v829_v5 = vld [vmem:[%s1117_s1 + $0x38] sm:$0xff]  ;;  %v721_v9 = vld [vmem:[%s1117_s1 + $0x50] sm:$0xff]  ;;  %v847_v11 = vld [vmem:[%s1117_s1 + $0x40] sm:$0xff]  ;;  %v539_v14 = vmul.f32 0.071428575, %v814_v2  ;;  %v542_v15 = vmul.f32 0.5, %v819_v3 }
   0x4   :  { %v722_v10 = vld [vmem:[%s1117_s1 + $0x58] sm:$0xff]  ;;  %v723_v12 = vld [vmem:[%s1117_s1 + $0x60] sm:$0xff]  ;;  %v724_v13 = vld [vmem:[%s1117_s1 + $0x68] sm:$0xff]  ;;  %v562_v19 = vmul.f32 0.071428575, %v824_v4  ;;  %v564_v20 = vmul.f32 0.5, %v829_v5  ;;  %v877_v26 = vsub.f32 %v538_v6, %v540_v7  ;;  %v544_v38 = vadd.f32 %v540_v7, %v538_v6 }
   0x5   :  { %v725_v16 = vld [vmem:[%s1117_s1 + $0x70] sm:$0xff]  ;;  %v751_v18 = vld [vmem:[%s1116_s0 + $0x58] sm:$0xff]  ;;  %v752_v21 = vld [vmem:[%s1116_s0 + $0x60] sm:$0xff]  ;;  %v563_v31 = vmul.f32 0.071428575, %v836_v8  ;;  %v566_v32 = vmul.f32 0.5, %v847_v11  ;;  %v543_v42 = vsub.f32 %v539_v14, %v542_v15  ;;  %v545_v43 = vadd.f32 %v542_v15, %v539_v14 }
   0x6   :  { %v750_v17 = vld [vmem:[%s1116_s0 + $0x50] sm:$0xff]  ;;  %v753_v22 = vld [vmem:[%s1116_s0 + $0x68] sm:$0xff]  ;;  %v378_v25 = vsub.f32 %v722_v10, %v751_v18  ;;  %v726_v27 = vld [vmem:[%s1117_s1 + $0x78] sm:$0xff]  ;;  %v386_v29 = vsub.f32 %v723_v12, %v752_v21  ;;  %v565_v44 = vsub.f32 %v562_v19, %v564_v20  ;;  %v568_v49 = vadd.f32 %v564_v20, %v562_v19 }
   0x7   :  { %v754_v23 = vld [vmem:[%s1116_s0 + $0x70] sm:$0xff]  ;;  %v371_v24 = vsub.f32 %v721_v9, %v750_v17  ;;  %v755_v28 = vld [vmem:[%s1116_s0 + $0x78] sm:$0xff]  ;;  %v394_v30 = vsub.f32 %v724_v13, %v753_v22  ;;  %v890_v33 = vld [vmem:[%s1116_s0] sm:$0xff]  ;;  %v567_v55 = vsub.f32 %v563_v31, %v566_v32  ;;  %v569_v56 = vadd.f32 %v566_v32, %v563_v31 }
   0x8   :  { %v895_v34 = vld [vmem:[%s1116_s0 + $0x10] sm:$0xff]  ;;  %v379_v36 = vmul.f32 %v378_v25, %v378_v25  ;;  %v402_v37 = vsub.f32 %v725_v16, %v754_v23  ;;  %v727_v39 = vld [vmem:[%s1117_s1 + $0x80] sm:$0xff]  ;;  %v387_v41 = vmul.f32 %v386_v29, %v386_v29  ;;  %v906_v45 = vld [vmem:[%s1116_s0 + $0x18] sm:$0xff]  ;;  %v410_v48 = vsub.f32 %v726_v27, %v755_v28 }
   0x9   :  { %v372_v35 = vmul.f32 %v371_v24, %v371_v24  ;;  %v756_v40 = vld [vmem:[%s1116_s0 + $0x80] sm:$0xff]  ;;  %v395_v47 = vmul.f32 %v394_v30, %v394_v30  ;;  %v728_v50 = vld [vmem:[%s1117_s1 + $0x88] sm:$0xff]  ;;  %v527_v53 = vmul.f32 0.071428575, %v890_v33  ;;  %v529_v54 = vmul.f32 0.5, %v895_v34  ;;  %v729_v57 = vld [vmem:[%s1117_s1 + $0x90] sm:$0xff] }
   0xa   :  { %v914_v51 = vld [vmem:[%s1116_s0 + $0x8] sm:$0xff]  ;;  %v758_v58 = vld [vmem:[%s1116_s0 + $0x90] sm:$0xff]  ;;  %v403_v60 = vmul.f32 %v402_v37, %v402_v37  ;;  %v418_v61 = vsub.f32 %v727_v39, %v756_v40  ;;  %v546_v62 = vsub.f32 %v544_v38, %v877_v26  ;;  %v531_v63 = vmul.f32 0.5, %v906_v45  ;;  %v730_v10 = vld [vmem:[%s1117_s1 + $0x98] sm:$0xff] }
   0xb   :  { %v380_v46 = vadd.f32 %v379_v36, %v372_v35  ;;  %v757_v52 = vld [vmem:[%s1116_s0 + $0x88] sm:$0xff]  ;;  %v547_v6 = vsub.f32 %v545_v43, %v543_v42  ;;  %v570_v7 = vsub.f32 %v568_v49, %v565_v44  ;;  %v571_v9 = vsub.f32 %v569_v56, %v567_v55  ;;  %v759_v12 = vld [vmem:[%s1116_s0 + $0x98] sm:$0xff] }
   0xc   :  { %v411_v14 = vmul.f32 %v410_v48, %v410_v48  ;;  %v426_v15 = vsub.f32 %v728_v50, %v757_v52  ;;  %v528_v16 = vmul.f32 0.071428575, %v914_v51  ;;  %v434_v17 = vsub.f32 %v729_v57, %v758_v58  ;;  %v731_v50 = vld [vmem:[%s1117_s1 + $0xa0] sm:$0xff] }
   0xd   :  { %v388_v59 = vadd.f32 %v387_v41, %v380_v46  ;;  %v530_v18 = vsub.f32 %v527_v53, %v529_v54  ;;  %v533_v19 = vadd.f32 %v529_v54, %v527_v53  ;;  %v419_v21 = vmul.f32 %v418_v61, %v418_v61  ;;  %v760_v52 = vld [vmem:[%s1116_s0 + $0xa0] sm:$0xff]  ;;  %v761_v61 = vld [vmem:[%s1116_s0 + $0xa8] sm:$0xff] }
   0xe   :  { %v442_v22 = vsub.f32 %v730_v10, %v759_v12  ;;  %v548_v23 = vmul.f32 %v547_v6, %v546_v62  ;;  %v572_v24 = vmul.f32 %v571_v9, %v570_v7  ;;  %v427_v27 = vmul.f32 %v426_v15, %v426_v15  ;;  %v733_v15 = vld [vmem:[%s1117_s1 + $0xb0] sm:$0xff] }
   0xf   :  { %v396_v13 = vadd.f32 %v395_v47, %v388_v59  ;;  %v532_v28 = vsub.f32 %v528_v16, %v531_v63  ;;  %v534_v29 = vadd.f32 %v531_v63, %v528_v16  ;;  %v435_v30 = vmul.f32 %v434_v17, %v434_v17  ;;  %v762_v16 = vld [vmem:[%s1116_s0 + $0xb0] sm:$0xff] }
  0x10   :  { %v535_v31 = vsub.f32 %v533_v19, %v530_v18  ;;  %v549_v32 = vmin.f32 %v544_v38, %v533_v19  ;;  %v550_v35 = vmax.f32 %v877_v26, %v530_v18  ;;  %v573_v46 = vmin.f32 %v568_v49, %v533_v19 }
  0x11   :  { %v404_v20 = vadd.f32 %v403_v60, %v396_v13  ;;  %v536_v37 = vsub.f32 %v534_v29, %v532_v28  ;;  %v553_v39 = vmin.f32 %v545_v43, %v534_v29  ;;  %v554_v40 = vmax.f32 %v543_v42, %v532_v28  ;;  %v732_v60 = vld [vmem:[%s1117_s1 + $0xa8] sm:$0xff] }
  0x12   :  { %v551_v41 = vsub.f32 %v549_v32, %v550_v35  ;;  %v574_v47 = vmax.f32 %v565_v44, %v530_v18  ;;  %v577_v48 = vmin.f32 %v569_v56, %v534_v29  ;;  %v578_v26 = vmax.f32 %v567_v55, %v532_v28 }
  0x13   :  { %v412_v25 = vadd.f32 %v411_v14, %v404_v20  ;;  %v537_v38 = vmul.f32 %v536_v37, %v535_v31  ;;  %v555_v54 = vsub.f32 %v553_v39, %v554_v40  ;;  %v443_v49 = vmul.f32 %v442_v22, %v442_v22  ;;  %v734_v20 = vld [vmem:[%s1117_s1 + $0xb8] sm:$0xff]  ;;  %v765_v37 = vld [vmem:[%s1116_s0 + $0xc8] sm:$0xff] }
  0x14   :  { %v552_v57 = vmax.f32 %v551_v41, 0.0  ;;  %v575_v58 = vsub.f32 %v573_v46, %v574_v47  ;;  %v579_v59 = vsub.f32 %v577_v48, %v578_v26  ;;  %v450_v44 = vsub.f32 %v731_v50, %v760_v52  ;;  %v747_v40 = vld [vmem:[%s1116_s0 + $0x38] sm:$0xff]  ;;  %v737_v46 = vld [vmem:[%s1117_s1 + $0xd0] sm:$0xff]  ;;  %v1003_v26 = vld [vmem:[%s1117_s1 + $0x20] sm:$0xff] }
  0x15   :  { %v420_v36 = vadd.f32 %v419_v21, %v412_v25  ;;  %v556_v43 = vmax.f32 %v555_v54, 0.0  ;;  %v558_v42 = vadd.f32 %v548_v23, %v537_v38  ;;  %v582_v55 = vadd.f32 %v572_v24, %v537_v38  ;;  %v763_v21 = vld [vmem:[%s1116_s0 + $0xb8] sm:$0xff]  ;;  %v735_v25 = vld [vmem:[%s1117_s1 + $0xc0] sm:$0xff]  ;;  %v766_v47 = vld [vmem:[%s1116_s0 + $0xd0] sm:$0xff] }
  0x16   :  { %v576_v56 = vmax.f32 %v575_v58, 0.0  ;;  %v580_v6 = vmax.f32 %v579_v59, 0.0  ;;  %v458_v10 = vsub.f32 %v732_v60, %v761_v61  ;;  %v451_v13 = vmul.f32 %v450_v44, %v450_v44  ;;  %v748_v38 = vld [vmem:[%s1116_s0 + $0x40] sm:$0xff]  ;;  %v745_v58 = vld [vmem:[%s1116_s0 + $0x28] sm:$0xff] }
  0x17   :  { %v428_v53 = vadd.f32 %v427_v27, %v420_v36  ;;  %v557_v63 = vmul.f32 %v556_v43, %v552_v57  ;;  %v466_v19 = vsub.f32 %v733_v15, %v762_v16  ;;  %v474_v24 = vsub.f32 %v734_v20, %v763_v21  ;;  %v764_v27 = vld [vmem:[%s1116_s0 + $0xc0] sm:$0xff]  ;;  %v736_v36 = vld [vmem:[%s1117_s1 + $0xc8] sm:$0xff]  ;;  %v767_v43 = vld [vmem:[%s1116_s0 + $0xd8] sm:$0xff] }
  0x18   :  { %v581_v9 = vmul.f32 %v580_v6, %v576_v56  ;;  %v459_v18 = vmul.f32 %v458_v10, %v458_v10  ;;  %v482_v35 = vsub.f32 %v735_v25, %v764_v27  ;;  %v490_v52 = vsub.f32 %v736_v36, %v765_v37  ;;  %v1008_v57 = vld [vmem:[%s1116_s0 + $0x20] sm:$0xff]  ;;  %v720_v60 = vld [vmem:[%s1117_s1 + $0x48] sm:$0xff] }
  0x19   :  { %v436_v62 = vadd.f32 %v435_v30, %v428_v53  ;;  %v559_v7 = vsub.f32 %v558_v42, %v557_v63  ;;  %v467_v23 = vmul.f32 %v466_v19, %v466_v19  ;;  %v475_v32 = vmul.f32 %v474_v24, %v474_v24  ;;  %v768_v6 = vld [vmem:[%s1116_s0 + $0xe0] sm:$0xff]  ;;  %v740_v25 = vld [vmem:[%s1117_s1 + $0xe8] sm:$0xff] }
  0x1a   :  { %v583_v14 = vsub.f32 %v582_v55, %v581_v9  ;;  %v483_v50 = vmul.f32 %v482_v35, %v482_v35  ;;  %v491_v59 = vmul.f32 %v490_v52, %v490_v52  ;;  %vm354_vm1 = vcmp.gt.f32.partialorder %v1008_v57, 0.0  ;;  %v769_v27 = vld [vmem:[%s1116_s0 + $0xe8] sm:$0xff] }
  0x1b   :  { %v444_v12 = vadd.f32 %v443_v49, %v436_v62  ;;  %773 = vrcp.f32 %v559_v7  ;;  %v360_v49 = vsub.f32 %v1003_v26, %v1008_v57  ;;  %vm357_vm2 = vcmp.eq.f32.partialorder %v1008_v57, 0.0 }
  0x1c   :  { %775 = vrcp.f32 %v583_v14 }
  0x1d   :  { %v452_v17 = vadd.f32 %v451_v13, %v444_v12 }
  0x1f   :  { %v460_v22 = vadd.f32 %v459_v18, %v452_v17 }
  0x21   :  { %v468_v31 = vadd.f32 %v467_v23, %v460_v22 }
  0x23   :  { %v476_v48 = vadd.f32 %v475_v32, %v468_v31 }
  0x25   :  { %v774_v28 = vpop.eup %773  ;;  %v484_v42 = vadd.f32 %v483_v50, %v476_v48  ;;  %v522_v50 = vsub.f32 %v740_v25, %v769_v27 }
  0x26   :  { %v561_v29 = vmul.f32 %v774_v28, %v557_v63  ;;  %v776_v30 = vpop.eup %775 }
  0x27   :  { %v585_v39 = vmul.f32 %v776_v30, %v581_v9  ;;  %v492_v61 = vadd.f32 %v491_v59, %v484_v42 }
  0x29   :  { %vm976_vm0 = vcmp.gt.f32.partialorder %v585_v39, %v561_v29 }
  0x2a   :  { %v990_v53 = vsel %vm976_vm0, %v829_v5, %v809_v1  ;;  %v998_v54 = vsel %vm976_vm0, %v747_v40, %v895_v34  ;;  %v498_v1 = vsub.f32 %v737_v46, %v766_v47  ;;  %v1014_v5 = vsel %vm976_vm0, %v847_v11, %v819_v3  ;;  %v738_v34 = vld [vmem:[%s1117_s1 + $0xd8] sm:$0xff]  ;;  %v746_v11 = vld [vmem:[%s1116_s0 + $0x30] sm:$0xff] }
  0x2b   :  { %777 = vrsqrt.f32 %v990_v53  ;;  %v1029_v3 = vsel %vm976_vm0, %v748_v38, %v906_v45  ;;  %v506_v44 = vsub.f32 %v738_v34, %v767_v43  ;;  %v587_v56 = vsel %vm976_vm0, %v824_v4, %v804_v0  ;;  %v739_v4 = vld [vmem:[%s1117_s1 + $0xe0] sm:$0xff] }
  0x2c   :  { %779 = vrsqrt.f32 %v998_v54  ;;  %v593_v45 = vsel %vm976_vm0, %v745_v58, %v890_v33  ;;  %v499_v62 = vmul.f32 %v498_v1, %v498_v1  ;;  %v588_v63 = vsel %vm976_vm0, %v836_v8, %v814_v2  ;;  %v749_v33 = vld [vmem:[%s1116_s0 + $0x48] sm:$0xff] }
  0x2d   :  { %781 = vrsqrt.f32 %v1014_v5  ;;  %v594_v0 = vsel %vm976_vm0, %v746_v11, %v914_v51  ;;  %v597_v55 = vsub.f32 %v587_v56, %v593_v45  ;;  %v361_v2 = vmul.f32 %v360_v49, %v360_v49 }
  0x2e   :  { %783 = vrsqrt.f32 %v1029_v3  ;;  %v599_v8 = vsub.f32 %v588_v63, %v594_v0  ;;  %v362_v7 = vsub.f32 %v720_v60, %v749_v33  ;;  %v500_v9 = vadd.f32 %v499_v62, %v492_v61 }
  0x2f   :  { %v507_v51 = vmul.f32 %v506_v44, %v506_v44  ;;  %v514_v10 = vsub.f32 %v739_v4, %v768_v6  ;;  %v591_v13 = vsel %vm976_vm0, %v720_v60, %v1003_v26  ;;  %vm604_vm3 = vcmp.eq.f32.partialorder %v990_v53, inf }
  0x30   :  { %vm606_vm4 = vcmp.eq.f32.partialorder %v990_v53, 0.0  ;;  %v607_v14 = vand.u32 2147483648, %v990_v53  ;;  %v598_v16 = vmul.f32 %v597_v55, %v597_v55  ;;  %vm611_vm5 = vcmp.eq.f32.partialorder %v998_v54, inf }
  0x31   :  { %v614_v18 = vand.u32 2147483648, %v998_v54  ;;  %v600_v19 = vmul.f32 %v599_v8, %v599_v8  ;;  %vm613_vm6 = vcmp.eq.f32.partialorder %v998_v54, 0.0  ;;  %vm621_vm7 = vcmp.eq.f32.partialorder %v1014_v5, inf }
  0x32   :  { %vm623_vm8 = vcmp.eq.f32.partialorder %v1014_v5, 0.0  ;;  %v624_v23 = vand.u32 2147483648, %v1014_v5  ;;  %vm628_vm9 = vcmp.eq.f32.partialorder %v1029_v3, inf  ;;  %v631_v31 = vand.u32 2147483648, %v1029_v3 }
  0x33   :  { %v363_v32 = vmul.f32 %v362_v7, %v362_v7  ;;  %vm630_vm10 = vcmp.eq.f32.partialorder %v1029_v3, 0.0  ;;  %v601_v37 = vadd.f32 %v600_v19, %v598_v16  ;;  %v637_v46 = vmul.f32 %v591_v13, %v591_v13 }
  0x34   :  { %v785_v47 = vmov 0.0   ;;  %v508_v38 = vadd.f32 %v507_v51, %v500_v9  ;;  %v592_v58 = vsel %vm976_vm0, %v1003_v26, %v720_v60  ;;  %v523_v56 = vmul.f32 %v522_v50, %v522_v50 }
  0x35   :  { %v778_v12 = vpop.eup %777  ;;  %v770_v48 = vsel %vm354_vm1, 1.0, %v785_v47  ;;  %v364_v42 = vadd.f32 %v363_v32, %v361_v2  ;;  %v639_v45 = vmul.f32 %v592_v58, %v592_v58 }
  0x36   :  { %v780_v15 = vpop.eup %779  ;;  %v603_v17 = vmul.f32 %v778_v12, %v990_v53  ;;  %v638_v11 = vmul.f32 %v770_v48, %v637_v46 }
  0x37   :  { %v610_v20 = vmul.f32 %v780_v15, %v998_v54  ;;  %v782_v21 = vpop.eup %781  ;;  %v640_v41 = vmul.f32 %v770_v48, %v639_v45 }
  0x38   :  { %v605_v22 = vsel %vm604_vm3, %v990_v53, %v603_v17  ;;  %v784_v24 = vpop.eup %783  ;;  %v620_v30 = vmul.f32 %v782_v21, %v1014_v5  ;;  %v642_v62 = vmul.f32 2.0, %v638_v11 }
  0x39   :  { %v608_v28 = vsel %vm606_vm4, %v607_v14, %v605_v22  ;;  %v612_v29 = vsel %vm611_vm5, %v998_v54, %v610_v20  ;;  %v627_v36 = vmul.f32 %v784_v24, %v1029_v3  ;;  %v515_v54 = vmul.f32 %v514_v10, %v514_v10 }
  0x3a   :  { %v615_v35 = vsel %vm613_vm6, %v614_v18, %v612_v29  ;;  %v622_v40 = vsel %vm621_vm7, %v1014_v5, %v620_v30  ;;  %v771_v5 = vsel %vm357_vm2, 1.0, %v785_v47 }
  0x3b   :  { %v616_v39 = vsub.f32 %v608_v28, %v615_v35  ;;  %v625_v52 = vsel %vm623_vm8, %v624_v23, %v622_v40  ;;  %v629_v53 = vsel %vm628_vm9, %v1029_v3, %v627_v36  ;;  %v516_v44 = vadd.f32 %v515_v54, %v508_v38 }
  0x3c   :  { %v632_v34 = vsel %vm630_vm10, %v631_v31, %v629_v53  ;;  %v365_v61 = vmul.f32 %v771_v5, %v364_v42 }
  0x3d   :  { %v617_v1 = vmul.f32 %v616_v39, %v616_v39  ;;  %v633_v43 = vsub.f32 %v625_v52, %v632_v34  ;;  %v524_v0 = vadd.f32 %v523_v56, %v516_v44 }
  0x3e   :  { %v645_v4 = vmul.f32 0.5, %v365_v61 }
  0x3f   :  { %v618_v59 = vadd.f32 %v617_v1, %v601_v37  ;;  %v634_v49 = vmul.f32 %v633_v43, %v633_v43  ;;  %v525_v33 = vmul.f32 %v770_v48, %v524_v0 }
  0x41   :  { %v635_v3 = vadd.f32 %v634_v49, %v618_v59 }
  0x43   :  { %v636_v63 = vsel %vm354_vm1, %v635_v3, 0.0 }
  0x44   :  { %v641_v26 = vmul.f32 5.0, %v636_v63 }
  0x46   :  { %v643_v60 = vadd.f32 %v642_v62, %v641_v26 }
  0x48   :  { %v644_v6 = vadd.f32 %v643_v60, %v640_v41 }
  0x4a   :  { %v646_v55 = vadd.f32 %v645_v4, %v644_v6 }
  0x4c   :  { %v647_v2 = vadd.f32 %v646_v55, %v525_v33 }
  0x4e   :  { %649 = vst [vmem:[%s1118_s2] sm:$0xff] %v647_v2 }

</bundles_post_ra>
